<compile_context>
chip_gen: v7x
topology: tpu7x:2x2x1
jax: 0.10.0
libtpu: 0.0.40
codegen_flags: <defaults>
</compile_context>

<pallas_src>
import functools
import random as pyrandom

import jax
import jax.numpy as jnp
from jax import lax
from jax.experimental import pallas as pl
from jax.experimental.pallas import tpu as pltpu


def _gather_kernel(rows_ref, x_rows_ref, out_ref, copy_sem, *, rows_in_block):
    """Gather `rows_in_block` rows of x_rows (HBM) into one (g, D) output block.

    rows_ref   : SMEM int32 flat row table (padded entries point at row 0).
    x_rows_ref : HBM ref (memory_space=pl.ANY) of shape (S*B, D).
    out_ref    : VMEM output block of shape (g, D); each row DMA lands directly
                 at its destination sublane offset — no vector work in the body.
    copy_sem   : single shared DMA semaphore; all copies are the same size, so
                 N starts followed by N waits guarantees all are complete.
    """
    base = pl.program_id(0) * rows_in_block
    copies = []
    for r in range(rows_in_block):
        src_row = rows_ref[base + r]
        cp = pltpu.make_async_copy(x_rows_ref.at[src_row], out_ref.at[r], copy_sem)
        cp.start()
        copies.append(cp)
    for cp in copies:
        cp.wait()


def _pallas_token_gather(x_sbd, idx_bk, *, rows_per_step=128):
    """Gather kept tokens from x (S, B, D) -> (K, B, D) without any transpose.

    x_sbd  : (S, B, D)
    idx_bk : (B, K) int32 token indices to keep (last one is CLS when excluded).
    """
    S, B, D = x_sbd.shape
    K = idx_bk.shape[1]
    n_rows = K * B

    # Rows per grid step: one flat group over (token, batch).  If the whole
    # gather fits in one step the block equals the full output (any size is
    # allowed); otherwise the block sublane dim must be a multiple of 8.
    if n_rows <= rows_per_step:
        g = n_rows
    else:
        g = max(8, (rows_per_step // 8) * 8)
    n_grps = pl.cdiv(n_rows, g)
    n_rows_padded = n_grps * g

    # Flat source-row table: output row j*B + b  <-  x_rows row idx[b, j]*B + b.
    rows = idx_bk.T.astype(jnp.int32) * B + jnp.arange(B, dtype=jnp.int32)[None, :]
    rows_flat = (
        jnp.zeros((n_rows_padded,), dtype=jnp.int32).at[:n_rows].set(rows.reshape(-1))
    )

    # Contiguous (free) reshape: row t*B + b of x_rows is x[t, b, :].
    x_rows = x_sbd.reshape(S * B, D)

    itemsize = jnp.dtype(x_sbd.dtype).itemsize
    cost = pl.CostEstimate(
        flops=0,
        transcendentals=0,
        bytes_accessed=2 * n_rows * D * itemsize,  # read kept rows + write them
    )

    kernel = functools.partial(_gather_kernel, rows_in_block=g)

    out_flat = pl.pallas_call(
        kernel,
        out_shape=jax.ShapeDtypeStruct((n_rows, D), x_sbd.dtype),
        grid_spec=pltpu.PrefetchScalarGridSpec(
            num_scalar_prefetch=1,
            grid=(n_grps,),
            in_specs=[pl.BlockSpec(memory_space=pl.ANY)],
            out_specs=pl.BlockSpec((g, D), lambda i, rows_ref: (i, 0)),
            scratch_shapes=[pltpu.SemaphoreType.DMA(())],
        ),
        compiler_params=pltpu.CompilerParams(
            dimension_semantics=("parallel",),
        ),
        cost_estimate=cost,
    )(rows_flat, x_rows)

    return out_flat.reshape(K, B, D)


def _make_keep_indices(key, S, B, num_patches_keep, exclude_cls_token):
    """Per-batch kept-token indices, matching the PyTorch randn/topk selection."""
    num_tokens = S - 1 if exclude_cls_token else S
    rand = jax.random.normal(key, (B, num_tokens), dtype=jnp.float32)
    _, patch_indices_keep = lax.top_k(rand, num_patches_keep)
    patch_indices_keep = patch_indices_keep.astype(jnp.int32)
    if exclude_cls_token:
        # CLS is the last token (index S-1); re-append it as the last kept token.
        cls_col = jnp.full((B, 1), S - 1, dtype=jnp.int32)
        return jnp.concatenate([patch_indices_keep, cls_col], axis=1)
    return patch_indices_keep


def patch_dropout_forward(x, roi, *, prob, exclude_cls_token=True,
                          training=True, key=None):
    """JAX/Pallas equivalent of PatchDropout.forward.

    x   : (S, B, D)
    roi : (S, B, R)
    Returns (x_out, roi_out) with shapes (K, B, D) / (K, B, R) where
    K = max(1, int((S - 1 if exclude_cls_token else S) * (1 - prob)))
        (+1 for the re-appended CLS token when exclude_cls_token).
    """
    if (not training) or (isinstance(prob, (float, int)) and prob == 0.0):
        return x, roi

    S, B, _ = x.shape
    num_tokens = S - 1 if exclude_cls_token else S

    if isinstance(prob, (tuple, list)):
        # TODO(synk): like the PyTorch module this draws with Python's RNG per
        # call; under jax.jit the drawn rate is frozen at trace time.
        p = pyrandom.random() * (prob[1] - prob[0]) + prob[0]
    else:
        p = prob
    keep_prob = 1.0 - p
    num_patches_keep = max(1, int(num_tokens * keep_prob))

    if key is None:
        key = jax.random.PRNGKey(0)
    idx = _make_keep_indices(key, S, B, num_patches_keep, exclude_cls_token)

    # x: Pallas manual-DMA gather, directly (S,B,D) -> (K,B,D), no transposes.
    x_keep = _pallas_token_gather(x, idx)

    # roi: lane-sparse (R << 128), gathered in plain JAX (only B*K*R elements).
    roi_keep = jnp.take_along_axis(roi, idx.T[:, :, None], axis=0)

    return x_keep, roi_keep


def _run_case(S, B, D, R, prob, seed):
    root = jax.random.PRNGKey(seed)
    kx, kroi, kdrop = jax.random.split(root, 3)
    x = jax.random.normal(kx, (S, B, D), dtype=jnp.float32)
    roi = jax.random.normal(kroi, (S, B, R), dtype=jnp.float32)

    x_out, roi_out = patch_dropout_forward(
        x, roi, prob=prob, exclude_cls_token=True, training=True, key=kdrop)
    jax.block_until_ready((x_out, roi_out))

    # Pure-JAX reference using the exact same index-selection helper.
    num_tokens = S - 1
    num_keep = max(1, int(num_tokens * (1.0 - prob)))
    idx = _make_keep_indices(kdrop, S, B, num_keep, exclude_cls_token=True)
    ref_x = jnp.take_along_axis(x, idx.T[:, :, None], axis=0)
    ref_roi = jnp.take_along_axis(roi, idx.T[:, :, None], axis=0)

    assert x_out.shape == (num_keep + 1, B, D), x_out.shape
    assert roi_out.shape == (num_keep + 1, B, R), roi_out.shape
    assert jnp.array_equal(x_out, ref_x), "x mismatch vs reference"
    assert jnp.array_equal(roi_out, ref_roi), "roi mismatch vs reference"
    return x, roi


if __name__ == "__main__":
    # Case 1: small deterministic example (S = 8 patches + 1 CLS, B = 2).
    # Single grid step (K*B = 10 rows <= rows_per_step).
    x_small, roi_small = _run_case(S=9, B=2, D=128, R=8, prob=0.5, seed=0)

    # Case 2: ragged edges — K*B = 14*10 = 140 rows > 128 rows/step, so the
    # last output block is partial and the padded row-table entries are hit.
    _run_case(S=28, B=10, D=128, R=8, prob=0.5, seed=1)

    # Eval / prob == 0 early-return path keeps shapes unchanged.
    x_eval, roi_eval = patch_dropout_forward(
        x_small, roi_small, prob=0.5, training=False)
    assert x_eval.shape == x_small.shape and roi_eval.shape == roi_small.shape

    print("KERNEL_OK")
</pallas_src>

<mosaic_0001>
module attributes {stable_mosaic.version = 11 : i64} {
  func.func @_gather_kernel(%arg0: i32, %arg1: memref<10xi32, #tpu.memory_space<smem>>, %arg2: memref<18x128xf32, #tpu.memory_space<any>>, %arg3: memref<10x128xf32, #tpu.memory_space<vmem>>, %arg4: memref<!tpu.dma_semaphore, #tpu.memory_space<semaphore_mem>>) attributes {dimension_semantics = [#tpu.dimension_semantics<parallel>], iteration_bounds = array<i64: 1>, scalar_prefetch = 1 : i64, scratch_operands = 1 : i64, tpu.core_type = #tpu.core_type<tc>, window_params = [{}, {transform_indices = @transform_1, window_bounds = array<i64: 10, 128>}]} {
    %c10_i32 = arith.constant 10 : i32
    %0 = arith.muli %arg0, %c10_i32 : i32
    %c0_i32 = arith.constant 0 : i32
    %1 = arith.addi %0, %c0_i32 : i32
    %2 = arith.index_cast %1 : i32 to index
    %3 = memref.load %arg1[%2] : memref<10xi32, #tpu.memory_space<smem>>
    %c0_i32_0 = arith.constant 0 : i32
    %c0_i32_1 = arith.constant 0 : i32
    %4 = tpu.memref_slice %arg2[%3, %c0_i32_1] : memref<18x128xf32, #tpu.memory_space<any>> -> memref<1x128xf32, #tpu.memory_space<any>>
    %5 = tpu.memref_squeeze %4 : memref<1x128xf32, #tpu.memory_space<any>> -> memref<128xf32, #tpu.memory_space<any>>
    %c0_i32_2 = arith.constant 0 : i32
    %6 = tpu.memref_slice %arg3[%c0_i32_0, %c0_i32_2] : memref<10x128xf32, #tpu.memory_space<vmem>> -> memref<1x128xf32, #tpu.memory_space<vmem>>
    %7 = tpu.memref_squeeze %6 : memref<1x128xf32, #tpu.memory_space<vmem>> -> memref<128xf32, #tpu.memory_space<vmem>>
    tpu.enqueue_dma source(%5 : memref<128xf32, #tpu.memory_space<any>>) target(%7 : memref<128xf32, #tpu.memory_space<vmem>>) target_semaphore(%arg4 : memref<!tpu.dma_semaphore, #tpu.memory_space<semaphore_mem>>)
    %c1_i32 = arith.constant 1 : i32
    %8 = arith.addi %0, %c1_i32 : i32
    %9 = arith.index_cast %8 : i32 to index
    %10 = memref.load %arg1[%9] : memref<10xi32, #tpu.memory_space<smem>>
    %c1_i32_3 = arith.constant 1 : i32
    %c0_i32_4 = arith.constant 0 : i32
    %11 = tpu.memref_slice %arg2[%10, %c0_i32_4] : memref<18x128xf32, #tpu.memory_space<any>> -> memref<1x128xf32, #tpu.memory_space<any>>
    %12 = tpu.memref_squeeze %11 : memref<1x128xf32, #tpu.memory_space<any>> -> memref<128xf32, #tpu.memory_space<any>>
    %c0_i32_5 = arith.constant 0 : i32
    %13 = tpu.memref_slice %arg3[%c1_i32_3, %c0_i32_5] : memref<10x128xf32, #tpu.memory_space<vmem>> -> memref<1x128xf32, #tpu.memory_space<vmem>>
    %14 = tpu.memref_squeeze %13 : memref<1x128xf32, #tpu.memory_space<vmem>> -> memref<128xf32, #tpu.memory_space<vmem>>
    tpu.enqueue_dma source(%12 : memref<128xf32, #tpu.memory_space<any>>) target(%14 : memref<128xf32, #tpu.memory_space<vmem>>) target_semaphore(%arg4 : memref<!tpu.dma_semaphore, #tpu.memory_space<semaphore_mem>>)
    %c2_i32 = arith.constant 2 : i32
    %15 = arith.addi %0, %c2_i32 : i32
    %16 = arith.index_cast %15 : i32 to index
    %17 = memref.load %arg1[%16] : memref<10xi32, #tpu.memory_space<smem>>
    %c2_i32_6 = arith.constant 2 : i32
    %c0_i32_7 = arith.constant 0 : i32
    %18 = tpu.memref_slice %arg2[%17, %c0_i32_7] : memref<18x128xf32, #tpu.memory_space<any>> -> memref<1x128xf32, #tpu.memory_space<any>>
    %19 = tpu.memref_squeeze %18 : memref<1x128xf32, #tpu.memory_space<any>> -> memref<128xf32, #tpu.memory_space<any>>
    %c0_i32_8 = arith.constant 0 : i32
    %20 = tpu.memref_slice %arg3[%c2_i32_6, %c0_i32_8] : memref<10x128xf32, #tpu.memory_space<vmem>> -> memref<1x128xf32, #tpu.memory_space<vmem>>
    %21 = tpu.memref_squeeze %20 : memref<1x128xf32, #tpu.memory_space<vmem>> -> memref<128xf32, #tpu.memory_space<vmem>>
    tpu.enqueue_dma source(%19 : memref<128xf32, #tpu.memory_space<any>>) target(%21 : memref<128xf32, #tpu.memory_space<vmem>>) target_semaphore(%arg4 : memref<!tpu.dma_semaphore, #tpu.memory_space<semaphore_mem>>)
    %c3_i32 = arith.constant 3 : i32
    %22 = arith.addi %0, %c3_i32 : i32
    %23 = arith.index_cast %22 : i32 to index
    %24 = memref.load %arg1[%23] : memref<10xi32, #tpu.memory_space<smem>>
    %c3_i32_9 = arith.constant 3 : i32
    %c0_i32_10 = arith.constant 0 : i32
    %25 = tpu.memref_slice %arg2[%24, %c0_i32_10] : memref<18x128xf32, #tpu.memory_space<any>> -> memref<1x128xf32, #tpu.memory_space<any>>
    %26 = tpu.memref_squeeze %25 : memref<1x128xf32, #tpu.memory_space<any>> -> memref<128xf32, #tpu.memory_space<any>>
    %c0_i32_11 = arith.constant 0 : i32
    %27 = tpu.memref_slice %arg3[%c3_i32_9, %c0_i32_11] : memref<10x128xf32, #tpu.memory_space<vmem>> -> memref<1x128xf32, #tpu.memory_space<vmem>>
    %28 = tpu.memref_squeeze %27 : memref<1x128xf32, #tpu.memory_space<vmem>> -> memref<128xf32, #tpu.memory_space<vmem>>
    tpu.enqueue_dma source(%26 : memref<128xf32, #tpu.memory_space<any>>) target(%28 : memref<128xf32, #tpu.memory_space<vmem>>) target_semaphore(%arg4 : memref<!tpu.dma_semaphore, #tpu.memory_space<semaphore_mem>>)
    %c4_i32 = arith.constant 4 : i32
    %29 = arith.addi %0, %c4_i32 : i32
    %30 = arith.index_cast %29 : i32 to index
    %31 = memref.load %arg1[%30] : memref<10xi32, #tpu.memory_space<smem>>
    %c4_i32_12 = arith.constant 4 : i32
    %c0_i32_13 = arith.constant 0 : i32
    %32 = tpu.memref_slice %arg2[%31, %c0_i32_13] : memref<18x128xf32, #tpu.memory_space<any>> -> memref<1x128xf32, #tpu.memory_space<any>>
    %33 = tpu.memref_squeeze %32 : memref<1x128xf32, #tpu.memory_space<any>> -> memref<128xf32, #tpu.memory_space<any>>
    %c0_i32_14 = arith.constant 0 : i32
    %34 = tpu.memref_slice %arg3[%c4_i32_12, %c0_i32_14] : memref<10x128xf32, #tpu.memory_space<vmem>> -> memref<1x128xf32, #tpu.memory_space<vmem>>
    %35 = tpu.memref_squeeze %34 : memref<1x128xf32, #tpu.memory_space<vmem>> -> memref<128xf32, #tpu.memory_space<vmem>>
    tpu.enqueue_dma source(%33 : memref<128xf32, #tpu.memory_space<any>>) target(%35 : memref<128xf32, #tpu.memory_space<vmem>>) target_semaphore(%arg4 : memref<!tpu.dma_semaphore, #tpu.memory_space<semaphore_mem>>)
    %c5_i32 = arith.constant 5 : i32
    %36 = arith.addi %0, %c5_i32 : i32
    %37 = arith.index_cast %36 : i32 to index
    %38 = memref.load %arg1[%37] : memref<10xi32, #tpu.memory_space<smem>>
    %c5_i32_15 = arith.constant 5 : i32
    %c0_i32_16 = arith.constant 0 : i32
    %39 = tpu.memref_slice %arg2[%38, %c0_i32_16] : memref<18x128xf32, #tpu.memory_space<any>> -> memref<1x128xf32, #tpu.memory_space<any>>
    %40 = tpu.memref_squeeze %39 : memref<1x128xf32, #tpu.memory_space<any>> -> memref<128xf32, #tpu.memory_space<any>>
    %c0_i32_17 = arith.constant 0 : i32
    %41 = tpu.memref_slice %arg3[%c5_i32_15, %c0_i32_17] : memref<10x128xf32, #tpu.memory_space<vmem>> -> memref<1x128xf32, #tpu.memory_space<vmem>>
    %42 = tpu.memref_squeeze %41 : memref<1x128xf32, #tpu.memory_space<vmem>> -> memref<128xf32, #tpu.memory_space<vmem>>
    tpu.enqueue_dma source(%40 : memref<128xf32, #tpu.memory_space<any>>) target(%42 : memref<128xf32, #tpu.memory_space<vmem>>) target_semaphore(%arg4 : memref<!tpu.dma_semaphore, #tpu.memory_space<semaphore_mem>>)
    %c6_i32 = arith.constant 6 : i32
    %43 = arith.addi %0, %c6_i32 : i32
    %44 = arith.index_cast %43 : i32 to index
    %45 = memref.load %arg1[%44] : memref<10xi32, #tpu.memory_space<smem>>
    %c6_i32_18 = arith.constant 6 : i32
    %c0_i32_19 = arith.constant 0 : i32
    %46 = tpu.memref_slice %arg2[%45, %c0_i32_19] : memref<18x128xf32, #tpu.memory_space<any>> -> memref<1x128xf32, #tpu.memory_space<any>>
    %47 = tpu.memref_squeeze %46 : memref<1x128xf32, #tpu.memory_space<any>> -> memref<128xf32, #tpu.memory_space<any>>
    %c0_i32_20 = arith.constant 0 : i32
    %48 = tpu.memref_slice %arg3[%c6_i32_18, %c0_i32_20] : memref<10x128xf32, #tpu.memory_space<vmem>> -> memref<1x128xf32, #tpu.memory_space<vmem>>
    %49 = tpu.memref_squeeze %48 : memref<1x128xf32, #tpu.memory_space<vmem>> -> memref<128xf32, #tpu.memory_space<vmem>>
    tpu.enqueue_dma source(%47 : memref<128xf32, #tpu.memory_space<any>>) target(%49 : memref<128xf32, #tpu.memory_space<vmem>>) target_semaphore(%arg4 : memref<!tpu.dma_semaphore, #tpu.memory_space<semaphore_mem>>)
    %c7_i32 = arith.constant 7 : i32
    %50 = arith.addi %0, %c7_i32 : i32
    %51 = arith.index_cast %50 : i32 to index
    %52 = memref.load %arg1[%51] : memref<10xi32, #tpu.memory_space<smem>>
    %c7_i32_21 = arith.constant 7 : i32
    %c0_i32_22 = arith.constant 0 : i32
    %53 = tpu.memref_slice %arg2[%52, %c0_i32_22] : memref<18x128xf32, #tpu.memory_space<any>> -> memref<1x128xf32, #tpu.memory_space<any>>
    %54 = tpu.memref_squeeze %53 : memref<1x128xf32, #tpu.memory_space<any>> -> memref<128xf32, #tpu.memory_space<any>>
    %c0_i32_23 = arith.constant 0 : i32
    %55 = tpu.memref_slice %arg3[%c7_i32_21, %c0_i32_23] : memref<10x128xf32, #tpu.memory_space<vmem>> -> memref<1x128xf32, #tpu.memory_space<vmem>>
    %56 = tpu.memref_squeeze %55 : memref<1x128xf32, #tpu.memory_space<vmem>> -> memref<128xf32, #tpu.memory_space<vmem>>
    tpu.enqueue_dma source(%54 : memref<128xf32, #tpu.memory_space<any>>) target(%56 : memref<128xf32, #tpu.memory_space<vmem>>) target_semaphore(%arg4 : memref<!tpu.dma_semaphore, #tpu.memory_space<semaphore_mem>>)
    %c8_i32 = arith.constant 8 : i32
    %57 = arith.addi %0, %c8_i32 : i32
    %58 = arith.index_cast %57 : i32 to index
    %59 = memref.load %arg1[%58] : memref<10xi32, #tpu.memory_space<smem>>
    %c8_i32_24 = arith.constant 8 : i32
    %c0_i32_25 = arith.constant 0 : i32
    %60 = tpu.memref_slice %arg2[%59, %c0_i32_25] : memref<18x128xf32, #tpu.memory_space<any>> -> memref<1x128xf32, #tpu.memory_space<any>>
    %61 = tpu.memref_squeeze %60 : memref<1x128xf32, #tpu.memory_space<any>> -> memref<128xf32, #tpu.memory_space<any>>
    %c0_i32_26 = arith.constant 0 : i32
    %62 = tpu.memref_slice %arg3[%c8_i32_24, %c0_i32_26] : memref<10x128xf32, #tpu.memory_space<vmem>> -> memref<1x128xf32, #tpu.memory_space<vmem>>
    %63 = tpu.memref_squeeze %62 : memref<1x128xf32, #tpu.memory_space<vmem>> -> memref<128xf32, #tpu.memory_space<vmem>>
    tpu.enqueue_dma source(%61 : memref<128xf32, #tpu.memory_space<any>>) target(%63 : memref<128xf32, #tpu.memory_space<vmem>>) target_semaphore(%arg4 : memref<!tpu.dma_semaphore, #tpu.memory_space<semaphore_mem>>)
    %c9_i32 = arith.constant 9 : i32
    %64 = arith.addi %0, %c9_i32 : i32
    %65 = arith.index_cast %64 : i32 to index
    %66 = memref.load %arg1[%65] : memref<10xi32, #tpu.memory_space<smem>>
    %c9_i32_27 = arith.constant 9 : i32
    %c0_i32_28 = arith.constant 0 : i32
    %67 = tpu.memref_slice %arg2[%66, %c0_i32_28] : memref<18x128xf32, #tpu.memory_space<any>> -> memref<1x128xf32, #tpu.memory_space<any>>
    %68 = tpu.memref_squeeze %67 : memref<1x128xf32, #tpu.memory_space<any>> -> memref<128xf32, #tpu.memory_space<any>>
    %c0_i32_29 = arith.constant 0 : i32
    %69 = tpu.memref_slice %arg3[%c9_i32_27, %c0_i32_29] : memref<10x128xf32, #tpu.memory_space<vmem>> -> memref<1x128xf32, #tpu.memory_space<vmem>>
    %70 = tpu.memref_squeeze %69 : memref<1x128xf32, #tpu.memory_space<vmem>> -> memref<128xf32, #tpu.memory_space<vmem>>
    tpu.enqueue_dma source(%68 : memref<128xf32, #tpu.memory_space<any>>) target(%70 : memref<128xf32, #tpu.memory_space<vmem>>) target_semaphore(%arg4 : memref<!tpu.dma_semaphore, #tpu.memory_space<semaphore_mem>>)
    %c0_i32_30 = arith.constant 0 : i32
    %c0_i32_31 = arith.constant 0 : i32
    %71 = tpu.memref_slice %arg2[%3, %c0_i32_31] : memref<18x128xf32, #tpu.memory_space<any>> -> memref<1x128xf32, #tpu.memory_space<any>>
    %72 = tpu.memref_squeeze %71 : memref<1x128xf32, #tpu.memory_space<any>> -> memref<128xf32, #tpu.memory_space<any>>
    %c0_i32_32 = arith.constant 0 : i32
    %73 = tpu.memref_slice %arg3[%c0_i32_30, %c0_i32_32] : memref<10x128xf32, #tpu.memory_space<vmem>> -> memref<1x128xf32, #tpu.memory_space<vmem>>
    %74 = tpu.memref_squeeze %73 : memref<1x128xf32, #tpu.memory_space<vmem>> -> memref<128xf32, #tpu.memory_space<vmem>>
    tpu.wait_dma2 semaphore(%arg4 : memref<!tpu.dma_semaphore, #tpu.memory_space<semaphore_mem>>) src(%72 : memref<128xf32, #tpu.memory_space<any>>) dst(%74 : memref<128xf32, #tpu.memory_space<vmem>>)
    %c1_i32_33 = arith.constant 1 : i32
    %c0_i32_34 = arith.constant 0 : i32
    %75 = tpu.memref_slice %arg2[%10, %c0_i32_34] : memref<18x128xf32, #tpu.memory_space<any>> -> memref<1x128xf32, #tpu.memory_space<any>>
    %76 = tpu.memref_squeeze %75 : memref<1x128xf32, #tpu.memory_space<any>> -> memref<128xf32, #tpu.memory_space<any>>
    %c0_i32_35 = arith.constant 0 : i32
    %77 = tpu.memref_slice %arg3[%c1_i32_33, %c0_i32_35] : memref<10x128xf32, #tpu.memory_space<vmem>> -> memref<1x128xf32, #tpu.memory_space<vmem>>
    %78 = tpu.memref_squeeze %77 : memref<1x128xf32, #tpu.memory_space<vmem>> -> memref<128xf32, #tpu.memory_space<vmem>>
    tpu.wait_dma2 semaphore(%arg4 : memref<!tpu.dma_semaphore, #tpu.memory_space<semaphore_mem>>) src(%76 : memref<128xf32, #tpu.memory_space<any>>) dst(%78 : memref<128xf32, #tpu.memory_space<vmem>>)
    %c2_i32_36 = arith.constant 2 : i32
    %c0_i32_37 = arith.constant 0 : i32
    %79 = tpu.memref_slice %arg2[%17, %c0_i32_37] : memref<18x128xf32, #tpu.memory_space<any>> -> memref<1x128xf32, #tpu.memory_space<any>>
    %80 = tpu.memref_squeeze %79 : memref<1x128xf32, #tpu.memory_space<any>> -> memref<128xf32, #tpu.memory_space<any>>
    %c0_i32_38 = arith.constant 0 : i32
    %81 = tpu.memref_slice %arg3[%c2_i32_36, %c0_i32_38] : memref<10x128xf32, #tpu.memory_space<vmem>> -> memref<1x128xf32, #tpu.memory_space<vmem>>
    %82 = tpu.memref_squeeze %81 : memref<1x128xf32, #tpu.memory_space<vmem>> -> memref<128xf32, #tpu.memory_space<vmem>>
    tpu.wait_dma2 semaphore(%arg4 : memref<!tpu.dma_semaphore, #tpu.memory_space<semaphore_mem>>) src(%80 : memref<128xf32, #tpu.memory_space<any>>) dst(%82 : memref<128xf32, #tpu.memory_space<vmem>>)
    %c3_i32_39 = arith.constant 3 : i32
    %c0_i32_40 = arith.constant 0 : i32
    %83 = tpu.memref_slice %arg2[%24, %c0_i32_40] : memref<18x128xf32, #tpu.memory_space<any>> -> memref<1x128xf32, #tpu.memory_space<any>>
    %84 = tpu.memref_squeeze %83 : memref<1x128xf32, #tpu.memory_space<any>> -> memref<128xf32, #tpu.memory_space<any>>
    %c0_i32_41 = arith.constant 0 : i32
    %85 = tpu.memref_slice %arg3[%c3_i32_39, %c0_i32_41] : memref<10x128xf32, #tpu.memory_space<vmem>> -> memref<1x128xf32, #tpu.memory_space<vmem>>
    %86 = tpu.memref_squeeze %85 : memref<1x128xf32, #tpu.memory_space<vmem>> -> memref<128xf32, #tpu.memory_space<vmem>>
    tpu.wait_dma2 semaphore(%arg4 : memref<!tpu.dma_semaphore, #tpu.memory_space<semaphore_mem>>) src(%84 : memref<128xf32, #tpu.memory_space<any>>) dst(%86 : memref<128xf32, #tpu.memory_space<vmem>>)
    %c4_i32_42 = arith.constant 4 : i32
    %c0_i32_43 = arith.constant 0 : i32
    %87 = tpu.memref_slice %arg2[%31, %c0_i32_43] : memref<18x128xf32, #tpu.memory_space<any>> -> memref<1x128xf32, #tpu.memory_space<any>>
    %88 = tpu.memref_squeeze %87 : memref<1x128xf32, #tpu.memory_space<any>> -> memref<128xf32, #tpu.memory_space<any>>
    %c0_i32_44 = arith.constant 0 : i32
    %89 = tpu.memref_slice %arg3[%c4_i32_42, %c0_i32_44] : memref<10x128xf32, #tpu.memory_space<vmem>> -> memref<1x128xf32, #tpu.memory_space<vmem>>
    %90 = tpu.memref_squeeze %89 : memref<1x128xf32, #tpu.memory_space<vmem>> -> memref<128xf32, #tpu.memory_space<vmem>>
    tpu.wait_dma2 semaphore(%arg4 : memref<!tpu.dma_semaphore, #tpu.memory_space<semaphore_mem>>) src(%88 : memref<128xf32, #tpu.memory_space<any>>) dst(%90 : memref<128xf32, #tpu.memory_space<vmem>>)
    %c5_i32_45 = arith.constant 5 : i32
    %c0_i32_46 = arith.constant 0 : i32
    %91 = tpu.memref_slice %arg2[%38, %c0_i32_46] : memref<18x128xf32, #tpu.memory_space<any>> -> memref<1x128xf32, #tpu.memory_space<any>>
    %92 = tpu.memref_squeeze %91 : memref<1x128xf32, #tpu.memory_space<any>> -> memref<128xf32, #tpu.memory_space<any>>
    %c0_i32_47 = arith.constant 0 : i32
    %93 = tpu.memref_slice %arg3[%c5_i32_45, %c0_i32_47] : memref<10x128xf32, #tpu.memory_space<vmem>> -> memref<1x128xf32, #tpu.memory_space<vmem>>
    %94 = tpu.memref_squeeze %93 : memref<1x128xf32, #tpu.memory_space<vmem>> -> memref<128xf32, #tpu.memory_space<vmem>>
    tpu.wait_dma2 semaphore(%arg4 : memref<!tpu.dma_semaphore, #tpu.memory_space<semaphore_mem>>) src(%92 : memref<128xf32, #tpu.memory_space<any>>) dst(%94 : memref<128xf32, #tpu.memory_space<vmem>>)
    %c6_i32_48 = arith.constant 6 : i32
    %c0_i32_49 = arith.constant 0 : i32
    %95 = tpu.memref_slice %arg2[%45, %c0_i32_49] : memref<18x128xf32, #tpu.memory_space<any>> -> memref<1x128xf32, #tpu.memory_space<any>>
    %96 = tpu.memref_squeeze %95 : memref<1x128xf32, #tpu.memory_space<any>> -> memref<128xf32, #tpu.memory_space<any>>
    %c0_i32_50 = arith.constant 0 : i32
    %97 = tpu.memref_slice %arg3[%c6_i32_48, %c0_i32_50] : memref<10x128xf32, #tpu.memory_space<vmem>> -> memref<1x128xf32, #tpu.memory_space<vmem>>
    %98 = tpu.memref_squeeze %97 : memref<1x128xf32, #tpu.memory_space<vmem>> -> memref<128xf32, #tpu.memory_space<vmem>>
    tpu.wait_dma2 semaphore(%arg4 : memref<!tpu.dma_semaphore, #tpu.memory_space<semaphore_mem>>) src(%96 : memref<128xf32, #tpu.memory_space<any>>) dst(%98 : memref<128xf32, #tpu.memory_space<vmem>>)
    %c7_i32_51 = arith.constant 7 : i32
    %c0_i32_52 = arith.constant 0 : i32
    %99 = tpu.memref_slice %arg2[%52, %c0_i32_52] : memref<18x128xf32, #tpu.memory_space<any>> -> memref<1x128xf32, #tpu.memory_space<any>>
    %100 = tpu.memref_squeeze %99 : memref<1x128xf32, #tpu.memory_space<any>> -> memref<128xf32, #tpu.memory_space<any>>
    %c0_i32_53 = arith.constant 0 : i32
    %101 = tpu.memref_slice %arg3[%c7_i32_51, %c0_i32_53] : memref<10x128xf32, #tpu.memory_space<vmem>> -> memref<1x128xf32, #tpu.memory_space<vmem>>
    %102 = tpu.memref_squeeze %101 : memref<1x128xf32, #tpu.memory_space<vmem>> -> memref<128xf32, #tpu.memory_space<vmem>>
    tpu.wait_dma2 semaphore(%arg4 : memref<!tpu.dma_semaphore, #tpu.memory_space<semaphore_mem>>) src(%100 : memref<128xf32, #tpu.memory_space<any>>) dst(%102 : memref<128xf32, #tpu.memory_space<vmem>>)
    %c8_i32_54 = arith.constant 8 : i32
    %c0_i32_55 = arith.constant 0 : i32
    %103 = tpu.memref_slice %arg2[%59, %c0_i32_55] : memref<18x128xf32, #tpu.memory_space<any>> -> memref<1x128xf32, #tpu.memory_space<any>>
    %104 = tpu.memref_squeeze %103 : memref<1x128xf32, #tpu.memory_space<any>> -> memref<128xf32, #tpu.memory_space<any>>
    %c0_i32_56 = arith.constant 0 : i32
    %105 = tpu.memref_slice %arg3[%c8_i32_54, %c0_i32_56] : memref<10x128xf32, #tpu.memory_space<vmem>> -> memref<1x128xf32, #tpu.memory_space<vmem>>
    %106 = tpu.memref_squeeze %105 : memref<1x128xf32, #tpu.memory_space<vmem>> -> memref<128xf32, #tpu.memory_space<vmem>>
    tpu.wait_dma2 semaphore(%arg4 : memref<!tpu.dma_semaphore, #tpu.memory_space<semaphore_mem>>) src(%104 : memref<128xf32, #tpu.memory_space<any>>) dst(%106 : memref<128xf32, #tpu.memory_space<vmem>>)
    %c9_i32_57 = arith.constant 9 : i32
    %c0_i32_58 = arith.constant 0 : i32
    %107 = tpu.memref_slice %arg2[%66, %c0_i32_58] : memref<18x128xf32, #tpu.memory_space<any>> -> memref<1x128xf32, #tpu.memory_space<any>>
    %108 = tpu.memref_squeeze %107 : memref<1x128xf32, #tpu.memory_space<any>> -> memref<128xf32, #tpu.memory_space<any>>
    %c0_i32_59 = arith.constant 0 : i32
    %109 = tpu.memref_slice %arg3[%c9_i32_57, %c0_i32_59] : memref<10x128xf32, #tpu.memory_space<vmem>> -> memref<1x128xf32, #tpu.memory_space<vmem>>
    %110 = tpu.memref_squeeze %109 : memref<1x128xf32, #tpu.memory_space<vmem>> -> memref<128xf32, #tpu.memory_space<vmem>>
    tpu.wait_dma2 semaphore(%arg4 : memref<!tpu.dma_semaphore, #tpu.memory_space<semaphore_mem>>) src(%108 : memref<128xf32, #tpu.memory_space<any>>) dst(%110 : memref<128xf32, #tpu.memory_space<vmem>>)
    return
  }
  func.func @transform_1(%arg0: i32, %arg1: memref<10xi32, #tpu.memory_space<smem>>) -> (i32, i32) {
    %c0_i32 = arith.constant 0 : i32
    %c0_i32_0 = arith.constant 0 : i32
    return %arg0, %c0_i32 : i32, i32
  }
}

</mosaic_0001>

<bundles_post_ra>
// kernel: tpu_custom_call.1
= control target key start
LH: loop header
LB: loop body
LE: loop exit
PB: predicated region body
PF: predicated region fallthrough
CT: control target
= control target key end

     0   :  { %s774_s0 = inlined_call_operand.hbm [shape: s32[10], index: 0, kind: input, shape index: {}]   ;;  %s775_s1 = inlined_call_operand.hbm [shape: f32[18,128], index: 1, kind: input, shape index: {}]   ;;  %s776_s2 = inlined_call_operand.hbm [shape: f32[10,128], index: 2, kind: output, shape index: {}]  }
   0x1   :  { %s266_s11 = scalar_lea.hbm %s774_s0, 16 }
   0x2   :  { %p267_p0 = scmp.ne.s32.totalorder %s774_s0, %s266_s11  ;;  %p270_p1 = scmp.lt.u32.totalorder %s266_s11, %s774_s0 }
   0x4   :  { %p272_p2 = pnand %p270_p1, %p267_p0 }
   0x6   :  { %275 = shalt.err (!%p272_p2)  }
   0x7   :  { %s544_s16 = smov [#allocation4]  }
   0x8   :  { %8 = dma.hbm_to_smem %s774_s0, 16, %s544_s16, [#allocation3] }
   0x9   :  { %538 = dma.done.wait [#allocation3], 16 }
   0xa   :  { %539 = vsyncadd [#allocation3], 4294967280 }
   0xb   :  { %10 = sfence }
   0xc   :  { %11 = vsyncpa [#allocation6], 0  ;;  %s13_s19 = sld [smem:[#allocation4]]  ;;  %s545_s20 = smov [#allocation5]  }
   0xd   :  { %s23_s21 = sshll.u32 %s545_s20, 4  ;;  %s584_s22 = sld [smem:[#allocation4 + $0x1]]  ;;  %s586_s21 = int_to_ptr.vmem [resolvable:$true] %s23_s21 }
   0xe   :  { %s546_s23 = smov [#allocation5 + $0x1]   ;;  %s588_s25 = sld [smem:[#allocation4 + $0x2]] }
   0xf   :  { %s39_s24 = sshll.u32 %s546_s23, 4  ;;  %s547_s26 = smov [#allocation5 + $0x2]   ;;  %s590_s24 = int_to_ptr.vmem [resolvable:$true] %s39_s24 }
  0x10   :  { %s55_s0 = sshll.u32 %s547_s26, 4  ;;  %s592_s27 = sld [smem:[#allocation4 + $0x3]]  ;;  %s594_s0 = int_to_ptr.vmem [resolvable:$true] %s55_s0 }
  0x11   :  { %s603_s8 = scalar_lea.hbm %s775_s1, 384 }
  0x12   :  { %s233_s28 = sshll.u32 %s13_s19, 4 }
  0x13   :  { %s15_s3 = scalar_lea.hbm %s775_s1, %s233_s28  ;;  %s235_s4 = sshll.u32 %s584_s22, 4 }
  0x14   :  { %s276_s5 = scalar_lea.hbm %s15_s3, 16  ;;  %p279_p4 = scmp.lt.u32.totalorder %s15_s3, %s775_s1 }
  0x15   :  { %p277_p3 = scmp.ne.s32.totalorder %s15_s3, %s276_s5  ;;  %p280_p5 = scmp.lt.u32.totalorder %s603_s8, %s276_s5 }
  0x16   :  { %p282_p7 = scmp.lt.u32.totalorder %s276_s5, %s15_s3 }
  0x17   :  { %p281_p6 = por %p280_p5, %p279_p4 }
  0x19   :  { %p283_p8 = por %p282_p7, %p281_p6 }
  0x1b   :  { %p284_p9 = pnand %p283_p8, %p277_p3 }
  0x1d   :  { %287 = shalt.err (!%p284_p9)  }
  0x1e   :  { %s288_s11 = scalar_lea.vmem %s586_s21, 16  ;;  %s612_s12 = scalar_lea.vmem %s586_s21, 256 }
  0x1f   :  { %p289_p10 = scmp.ne.s32.totalorder %s586_s21, %s288_s11  ;;  %p293_p11 = scmp.lt.s32.totalorder %s586_s21, %s586_s21 }
  0x20   :  { %p294_p12 = scmp.lt.s32.totalorder %s612_s12, %s288_s11 }
  0x22   :  { %p295_p13 = por %p294_p12, %p293_p11 }
  0x24   :  { %p296_p0 = pnand %p295_p13, %p289_p10 }
  0x26   :  { %299 = shalt.err (!%p296_p0)  }
  0x27   :  { %26 = dma.hbm_to_vmem [thread:$0]  %s15_s3, 16, %s586_s21, [#allocation2] }
  0x28   :  { %s30_s15 = scalar_lea.hbm %s775_s1, %s235_s4  ;;  %s237_s16 = sshll.u32 %s588_s25, 4 }
  0x29   :  { %s300_s17 = scalar_lea.hbm %s30_s15, 16  ;;  %p303_p2 = scmp.lt.u32.totalorder %s30_s15, %s775_s1 }
  0x2a   :  { %p301_p1 = scmp.ne.s32.totalorder %s30_s15, %s300_s17  ;;  %p304_p3 = scmp.lt.u32.totalorder %s603_s8, %s300_s17 }
  0x2b   :  { %p306_p5 = scmp.lt.u32.totalorder %s300_s17, %s30_s15 }
  0x2c   :  { %p305_p4 = por %p304_p3, %p303_p2 }
  0x2e   :  { %p307_p6 = por %p306_p5, %p305_p4 }
  0x30   :  { %p308_p7 = pnand %p307_p6, %p301_p1 }
  0x32   :  { %311 = shalt.err (!%p308_p7)  }
  0x33   :  { %s312_s20 = scalar_lea.vmem %s590_s24, 16  ;;  %p317_p9 = scmp.lt.s32.totalorder %s590_s24, %s586_s21 }
  0x34   :  { %p313_p8 = scmp.ne.s32.totalorder %s590_s24, %s312_s20  ;;  %p318_p10 = scmp.lt.s32.totalorder %s612_s12, %s312_s20 }
  0x36   :  { %p319_p12 = por %p318_p10, %p317_p9 }
  0x38   :  { %p320_p13 = pnand %p319_p12, %p313_p8 }
  0x3a   :  { %323 = shalt.err (!%p320_p13)  }
  0x3b   :  { %42 = dma.hbm_to_vmem [thread:$0]  %s30_s15, 16, %s590_s24, [#allocation2] }
  0x3c   :  { %s46_s25 = scalar_lea.hbm %s775_s1, %s237_s16  ;;  %s239_s26 = sshll.u32 %s592_s27, 4 }
  0x3d   :  { %s324_s28 = scalar_lea.hbm %s46_s25, 16  ;;  %p327_p1 = scmp.lt.u32.totalorder %s46_s25, %s775_s1 }
  0x3e   :  { %p325_p0 = scmp.ne.s32.totalorder %s46_s25, %s324_s28  ;;  %p328_p2 = scmp.lt.u32.totalorder %s603_s8, %s324_s28 }
  0x3f   :  { %p330_p4 = scmp.lt.u32.totalorder %s324_s28, %s46_s25 }
  0x40   :  { %p329_p3 = por %p328_p2, %p327_p1 }
  0x42   :  { %p331_p5 = por %p330_p4, %p329_p3 }
  0x44   :  { %p332_p6 = pnand %p331_p5, %p325_p0 }
  0x46   :  { %335 = shalt.err (!%p332_p6)  }
  0x47   :  { %s336_s24 = scalar_lea.vmem %s594_s0, 16  ;;  %p341_p8 = scmp.lt.s32.totalorder %s594_s0, %s586_s21 }
  0x48   :  { %p337_p7 = scmp.ne.s32.totalorder %s594_s0, %s336_s24  ;;  %p342_p9 = scmp.lt.s32.totalorder %s612_s12, %s336_s24 }
  0x4a   :  { %p343_p10 = por %p342_p9, %p341_p8 }
  0x4c   :  { %p344_p12 = pnand %p343_p10, %p337_p7 }
  0x4e   :  { %347 = shalt.err (!%p344_p12)  }
  0x4f   :  { %58 = dma.hbm_to_vmem [thread:$0]  %s46_s25, 16, %s594_s0, [#allocation2] }
  0x50   :  { %s62_s4 = scalar_lea.hbm %s775_s1, %s239_s26  ;;  %s548_s5 = smov [#allocation5 + $0x3]  }
  0x51   :  { %s71_s6 = sshll.u32 %s548_s5, 4  ;;  %s652_s7 = sld [smem:[#allocation4 + $0x4]]  ;;  %s72_s6 = int_to_ptr.vmem [resolvable:$true] %s71_s6 }
  0x52   :  { %s348_s9 = scalar_lea.hbm %s62_s4, 16  ;;  %p351_p0 = scmp.lt.u32.totalorder %s62_s4, %s775_s1 }
  0x53   :  { %p349_p13 = scmp.ne.s32.totalorder %s62_s4, %s348_s9  ;;  %p352_p1 = scmp.lt.u32.totalorder %s603_s8, %s348_s9 }
  0x54   :  { %p354_p3 = scmp.lt.u32.totalorder %s348_s9, %s62_s4 }
  0x55   :  { %p353_p2 = por %p352_p1, %p351_p0 }
  0x57   :  { %p355_p4 = por %p354_p3, %p353_p2 }
  0x59   :  { %p356_p5 = pnand %p355_p4, %p349_p13 }
  0x5b   :  { %359 = shalt.err (!%p356_p5)  }
  0x5c   :  { %s360_s0 = scalar_lea.vmem %s72_s6, 16  ;;  %p365_p7 = scmp.lt.s32.totalorder %s72_s6, %s586_s21 }
  0x5d   :  { %p361_p6 = scmp.ne.s32.totalorder %s72_s6, %s360_s0  ;;  %p366_p8 = scmp.lt.s32.totalorder %s612_s12, %s360_s0 }
  0x5f   :  { %p367_p9 = por %p366_p8, %p365_p7 }
  0x61   :  { %p368_p10 = pnand %p367_p9, %p361_p6 }
  0x63   :  { %371 = shalt.err (!%p368_p10)  }
  0x64   :  { %74 = dma.hbm_to_vmem [thread:$0]  %s62_s4, 16, %s72_s6, [#allocation2] }
  0x65   :  { %s549_s13 = smov [#allocation5 + $0x4]   ;;  %s660_s15 = sld [smem:[#allocation4 + $0x5]] }
  0x66   :  { %s87_s14 = sshll.u32 %s549_s13, 4  ;;  %s550_s16 = smov [#allocation5 + $0x5]   ;;  %s88_s14 = int_to_ptr.vmem [resolvable:$true] %s87_s14 }
  0x67   :  { %s103_s17 = sshll.u32 %s550_s16, 4  ;;  %s662_s18 = sld [smem:[#allocation4 + $0x6]]  ;;  %s665_s17 = int_to_ptr.vmem [resolvable:$true] %s103_s17 }
  0x68   :  { %s241_s19 = sshll.u32 %s652_s7, 4 }
  0x69   :  { %s78_s23 = scalar_lea.hbm %s775_s1, %s241_s19 }
  0x6a   :  { %s372_s25 = scalar_lea.hbm %s78_s23, 16  ;;  %p375_p13 = scmp.lt.u32.totalorder %s78_s23, %s775_s1 }
  0x6b   :  { %p373_p12 = scmp.ne.s32.totalorder %s78_s23, %s372_s25  ;;  %p376_p0 = scmp.lt.u32.totalorder %s603_s8, %s372_s25 }
  0x6c   :  { %p378_p2 = scmp.lt.u32.totalorder %s372_s25, %s78_s23 }
  0x6d   :  { %p377_p1 = por %p376_p0, %p375_p13 }
  0x6f   :  { %p379_p3 = por %p378_p2, %p377_p1 }
  0x71   :  { %p380_p4 = pnand %p379_p3, %p373_p12 }
  0x73   :  { %383 = shalt.err (!%p380_p4)  }
  0x74   :  { %s384_s29 = scalar_lea.vmem %s88_s14, 16  ;;  %p389_p6 = scmp.lt.s32.totalorder %s88_s14, %s586_s21 }
  0x75   :  { %p385_p5 = scmp.ne.s32.totalorder %s88_s14, %s384_s29  ;;  %p390_p7 = scmp.lt.s32.totalorder %s612_s12, %s384_s29 }
  0x77   :  { %p391_p8 = por %p390_p7, %p389_p6 }
  0x79   :  { %p392_p9 = pnand %p391_p8, %p385_p5 }
  0x7b   :  { %395 = shalt.err (!%p392_p9)  }
  0x7c   :  { %90 = dma.hbm_to_vmem [thread:$0]  %s78_s23, 16, %s88_s14, [#allocation2] }
  0x7d   :  { %s243_s30 = sshll.u32 %s660_s15, 4  ;;  %s551_s24 = smov [#allocation5 + $0x6]  }
  0x7e   :  { %s119_s27 = sshll.u32 %s551_s24, 4  ;;  %s94_s5 = scalar_lea.hbm %s775_s1, %s243_s30  ;;  %s680_s27 = int_to_ptr.vmem [resolvable:$true] %s119_s27 }
  0x7f   :  { %s396_s6 = scalar_lea.hbm %s94_s5, 16  ;;  %p399_p12 = scmp.lt.u32.totalorder %s94_s5, %s775_s1 }
  0x80   :  { %p397_p10 = scmp.ne.s32.totalorder %s94_s5, %s396_s6  ;;  %p400_p13 = scmp.lt.u32.totalorder %s603_s8, %s396_s6 }
  0x81   :  { %p402_p1 = scmp.lt.u32.totalorder %s396_s6, %s94_s5 }
  0x82   :  { %p401_p0 = por %p400_p13, %p399_p12 }
  0x84   :  { %p403_p2 = por %p402_p1, %p401_p0 }
  0x86   :  { %p404_p3 = pnand %p403_p2, %p397_p10 }
  0x88   :  { %407 = shalt.err (!%p404_p3)  }
  0x89   :  { %s408_s10 = scalar_lea.vmem %s665_s17, 16  ;;  %p413_p5 = scmp.lt.s32.totalorder %s665_s17, %s586_s21 }
  0x8a   :  { %p409_p4 = scmp.ne.s32.totalorder %s665_s17, %s408_s10  ;;  %p414_p6 = scmp.lt.s32.totalorder %s612_s12, %s408_s10 }
  0x8c   :  { %p415_p7 = por %p414_p6, %p413_p5 }
  0x8e   :  { %p416_p8 = pnand %p415_p7, %p409_p4 }
  0x90   :  { %419 = shalt.err (!%p416_p8)  }
  0x91   :  { %106 = dma.hbm_to_vmem [thread:$0]  %s94_s5, 16, %s665_s17, [#allocation2] }
  0x92   :  { %s245_s11 = sshll.u32 %s662_s18, 4  ;;  %s693_s0 = sld [smem:[#allocation4 + $0x7]] }
  0x93   :  { %s110_s15 = scalar_lea.hbm %s775_s1, %s245_s11 }
  0x94   :  { %s420_s16 = scalar_lea.hbm %s110_s15, 16  ;;  %p423_p10 = scmp.lt.u32.totalorder %s110_s15, %s775_s1 }
  0x95   :  { %p421_p9 = scmp.ne.s32.totalorder %s110_s15, %s420_s16  ;;  %p424_p12 = scmp.lt.u32.totalorder %s603_s8, %s420_s16 }
  0x96   :  { %p426_p0 = scmp.lt.u32.totalorder %s420_s16, %s110_s15 }
  0x97   :  { %p425_p13 = por %p424_p12, %p423_p10 }
  0x99   :  { %p427_p1 = por %p426_p0, %p425_p13 }
  0x9b   :  { %p428_p2 = pnand %p427_p1, %p421_p9 }
  0x9d   :  { %431 = shalt.err (!%p428_p2)  }
  0x9e   :  { %s432_s17 = scalar_lea.vmem %s680_s27, 16  ;;  %p437_p4 = scmp.lt.s32.totalorder %s680_s27, %s586_s21 }
  0x9f   :  { %p433_p3 = scmp.ne.s32.totalorder %s680_s27, %s432_s17  ;;  %p438_p5 = scmp.lt.s32.totalorder %s612_s12, %s432_s17 }
  0xa1   :  { %p439_p6 = por %p438_p5, %p437_p4 }
  0xa3   :  { %p440_p7 = pnand %p439_p6, %p433_p3 }
  0xa5   :  { %443 = shalt.err (!%p440_p7)  }
  0xa6   :  { %122 = dma.hbm_to_vmem [thread:$0]  %s110_s15, 16, %s680_s27, [#allocation2] }
  0xa7   :  { %s552_s18 = smov [#allocation5 + $0x7]   ;;  %s708_s23 = sld [smem:[#allocation4 + $0x8]] }
  0xa8   :  { %s135_s22 = sshll.u32 %s552_s18, 4  ;;  %s553_s25 = smov [#allocation5 + $0x8]   ;;  %s136_s22 = int_to_ptr.vmem [resolvable:$true] %s135_s22 }
  0xa9   :  { %s151_s26 = sshll.u32 %s553_s25, 4  ;;  %s710_s28 = sld [smem:[#allocation4 + $0x9]]  ;;  %s713_s26 = int_to_ptr.vmem [resolvable:$true] %s151_s26 }
  0xaa   :  { %s247_s29 = sshll.u32 %s693_s0, 4 }
  0xab   :  { %s126_s3 = scalar_lea.hbm %s775_s1, %s247_s29 }
  0xac   :  { %s444_s4 = scalar_lea.hbm %s126_s3, 16  ;;  %p447_p9 = scmp.lt.u32.totalorder %s126_s3, %s775_s1 }
  0xad   :  { %p445_p8 = scmp.ne.s32.totalorder %s126_s3, %s444_s4  ;;  %p448_p10 = scmp.lt.u32.totalorder %s603_s8, %s444_s4 }
  0xae   :  { %p450_p13 = scmp.lt.u32.totalorder %s444_s4, %s126_s3 }
  0xaf   :  { %p449_p12 = por %p448_p10, %p447_p9 }
  0xb1   :  { %p451_p0 = por %p450_p13, %p449_p12 }
  0xb3   :  { %p452_p1 = pnand %p451_p0, %p445_p8 }
  0xb5   :  { %455 = shalt.err (!%p452_p1)  }
  0xb6   :  { %s456_s6 = scalar_lea.vmem %s136_s22, 16  ;;  %p461_p3 = scmp.lt.s32.totalorder %s136_s22, %s586_s21 }
  0xb7   :  { %p457_p2 = scmp.ne.s32.totalorder %s136_s22, %s456_s6  ;;  %p462_p4 = scmp.lt.s32.totalorder %s612_s12, %s456_s6 }
  0xb9   :  { %p463_p5 = por %p462_p4, %p461_p3 }
  0xbb   :  { %p464_p6 = pnand %p463_p5, %p457_p2 }
  0xbd   :  { %467 = shalt.err (!%p464_p6)  }
  0xbe   :  { %138 = dma.hbm_to_vmem [thread:$0]  %s126_s3, 16, %s136_s22, [#allocation2] }
  0xbf   :  { %s249_s7 = sshll.u32 %s708_s23, 4  ;;  %s554_s9 = smov [#allocation5 + $0x9]  }
  0xc0   :  { %s167_s10 = sshll.u32 %s554_s9, 4  ;;  %s142_s13 = scalar_lea.hbm %s775_s1, %s249_s7  ;;  %s728_s10 = int_to_ptr.vmem [resolvable:$true] %s167_s10 }
  0xc1   :  { %s468_s14 = scalar_lea.hbm %s142_s13, 16  ;;  %p471_p8 = scmp.lt.u32.totalorder %s142_s13, %s775_s1 }
  0xc2   :  { %p469_p7 = scmp.ne.s32.totalorder %s142_s13, %s468_s14  ;;  %p472_p9 = scmp.lt.u32.totalorder %s603_s8, %s468_s14 }
  0xc3   :  { %p474_p12 = scmp.lt.u32.totalorder %s468_s14, %s142_s13 }
  0xc4   :  { %p473_p10 = por %p472_p9, %p471_p8 }
  0xc6   :  { %p475_p13 = por %p474_p12, %p473_p10 }
  0xc8   :  { %p476_p0 = pnand %p475_p13, %p469_p7 }
  0xca   :  { %479 = shalt.err (!%p476_p0)  }
  0xcb   :  { %s480_s19 = scalar_lea.vmem %s713_s26, 16  ;;  %p485_p2 = scmp.lt.s32.totalorder %s713_s26, %s586_s21 }
  0xcc   :  { %p481_p1 = scmp.ne.s32.totalorder %s713_s26, %s480_s19  ;;  %p486_p3 = scmp.lt.s32.totalorder %s612_s12, %s480_s19 }
  0xce   :  { %p487_p4 = por %p486_p3, %p485_p2 }
  0xd0   :  { %p488_p5 = pnand %p487_p4, %p481_p1 }
  0xd2   :  { %491 = shalt.err (!%p488_p5)  }
  0xd3   :  { %154 = dma.hbm_to_vmem [thread:$0]  %s142_s13, 16, %s713_s26, [#allocation2] }
  0xd4   :  { %s251_s20 = sshll.u32 %s710_s28, 4 }
  0xd5   :  { %s158_s22 = scalar_lea.hbm %s775_s1, %s251_s20 }
  0xd6   :  { %s492_s23 = scalar_lea.hbm %s158_s22, 16  ;;  %p495_p7 = scmp.lt.u32.totalorder %s158_s22, %s775_s1 }
  0xd7   :  { %p493_p6 = scmp.ne.s32.totalorder %s158_s22, %s492_s23  ;;  %p496_p8 = scmp.lt.u32.totalorder %s603_s8, %s492_s23 }
  0xd8   :  { %p498_p10 = scmp.lt.u32.totalorder %s492_s23, %s158_s22 }
  0xd9   :  { %p497_p9 = por %p496_p8, %p495_p7 }
  0xdb   :  { %p499_p12 = por %p498_p10, %p497_p9 }
  0xdd   :  { %p500_p13 = pnand %p499_p12, %p493_p6 }
  0xdf   :  { %503 = shalt.err (!%p500_p13)  }
  0xe0   :  { %s504_s26 = scalar_lea.vmem %s728_s10, 16  ;;  %p509_p1 = scmp.lt.s32.totalorder %s728_s10, %s586_s21 }
  0xe1   :  { %p505_p0 = scmp.ne.s32.totalorder %s728_s10, %s504_s26  ;;  %p510_p2 = scmp.lt.s32.totalorder %s612_s12, %s504_s26 }
  0xe3   :  { %p511_p3 = por %p510_p2, %p509_p1 }
  0xe5   :  { %p512_p4 = pnand %p511_p3, %p505_p0 }
  0xe7   :  { %515 = shalt.err (!%p512_p4)  }
  0xe8   :  { %170 = dma.hbm_to_vmem [thread:$0]  %s158_s22, 16, %s728_s10, [#allocation2] }
  0xe9   :  { %540 = dma.done.wait [#allocation2], 160 }
  0xea   :  { %541 = vsyncadd [#allocation2], 4294967136  ;;  %p517_p5 = scmp.ne.s32.totalorder %s586_s21, %s612_s12  ;;  %p522_p6 = scmp.lt.s32.totalorder %s612_s12, %s612_s12 }
  0xec   :  { %p523_p7 = por %p522_p6, %p293_p11 }
  0xee   :  { %p524_p8 = pnand %p523_p7, %p517_p5 }
  0xf0   :  { %527 = shalt.err (!%p524_p8)
}
  0xf1   :  { %s528_s28 = scalar_lea.hbm %s776_s2, 256 }
  0xf2   :  { %p529_p9 = scmp.ne.s32.totalorder %s776_s2, %s528_s28  ;;  %p532_p10 = scmp.lt.u32.totalorder %s528_s28, %s776_s2 }
  0xf4   :  { %p534_p12 = pnand %p532_p10, %p529_p9 }
  0xf6   :  { %537 = shalt.err (!%p534_p12)
}
  0xf7   :  { %s555_s5 = smov 128   ;;  %s556_s12 = smov 8  }
  0xf8   :  { %202 = dma.vmem_to_hbm [thread:$0]  %s586_s21, 256, %s776_s2, [#allocation6], %s555_s5, %s555_s5, %s556_s12  }
  0xf9   :  { %542 = dma.done.wait [#allocation6], 256  }
  0xfa   :  { %543 = vsyncadd [#allocation6], 4294967040 }
  0xfb   :  { %206 = vsyncpa [#allocation6], 1 }
  0xfc   :  { %207 = vsyncmov [#allocation2] }
  0xff   :  { %s208_s7 = vpop.sfrf %207 }
 0x100   :  { %p252_p11 = scmp.ne.s32.totalorder %s208_s7, 0 }
 0x102   :  { %212 = shalt.err (%p252_p11)  }

</bundles_post_ra>
